<compile_context>
chip_gen: v6e
topology: v6e:2x2x1
jax: 0.10.0
libtpu: 0.0.40
codegen_flags: <defaults>
</compile_context>

<pallas_src>
import jax
import jax.numpy as jnp
from jax.experimental import pallas as pl
from jax.experimental.pallas import tpu as pltpu


def build_grid(resolution):
    """JAX port of the slot-attention build_grid: (1, H, W, 2*len(resolution))."""
    ranges = [jnp.linspace(0.0, 1.0, num=r, dtype=jnp.float32) for r in resolution]
    grid = jnp.stack(jnp.meshgrid(*ranges, indexing="ij"), axis=-1)
    grid = grid.reshape(resolution[0], resolution[1], -1)
    grid = grid[None]                                     # (1, H, W, 2)
    return jnp.concatenate([grid, 1.0 - grid], axis=-1)   # (1, H, W, 4)


def _soft_pos_embed_kernel(w_ref, b_ref, gT_ref, x_ref, o_ref):
    # w_ref:  (hidden, C+1)   Linear weight                    (grid-invariant)
    # b_ref:  (hidden, 1)     Linear bias                      (grid-invariant)
    # gT_ref: (C+1, H*W)      transposed positional grid       (grid-invariant)
    # x_ref:  (hidden, H*W)   one batch element (batch dim squeezed)
    # o_ref:  (hidden, H*W)
    acc = x_ref[...].astype(jnp.float32) + b_ref[...]     # bias broadcast over lanes
    w = w_ref[...].astype(jnp.float32)
    gT = gT_ref[...].astype(jnp.float32)
    # K = C+1 is tiny (4): unrolled VPU outer-product FMAs instead of an MXU matmul.
    for c in range(w_ref.shape[1]):                       # static Python unroll
        acc = acc + w[:, c:c + 1] * gT[c:c + 1, :]
    o_ref[...] = acc.astype(o_ref.dtype)


def soft_position_embed(inputs_nchw, weight, bias, grid_hwC):
    """inputs_nchw: (B, hidden, H, W); weight: (hidden, C+1); bias: (hidden,);
    grid_hwC: (1, H, W, C+1).  Returns (B, hidden, H, W)."""
    B, hidden, H, W = inputs_nchw.shape
    Cp1 = weight.shape[1]
    HW = H * W

    x = inputs_nchw.reshape(B, hidden, HW)                # glue: reshape only
    grid_T = grid_hwC.reshape(HW, Cp1).T                  # (C+1, H*W)
    bias2d = bias.reshape(hidden, 1)

    # Grid-invariant operands: constant index map (blocks equal full array shapes,
    # so the (8,128) divisibility constraint does not apply).
    const2d = lambda b: (0, 0)

    out = pl.pallas_call(
        _soft_pos_embed_kernel,
        out_shape=jax.ShapeDtypeStruct((B, hidden, HW), inputs_nchw.dtype),
        grid_spec=pltpu.PrefetchScalarGridSpec(
            num_scalar_prefetch=0,
            grid=(B,),
            in_specs=[
                pl.BlockSpec((hidden, Cp1), const2d),
                pl.BlockSpec((hidden, 1), const2d),
                pl.BlockSpec((Cp1, HW), const2d),
                pl.BlockSpec((None, hidden, HW), lambda b: (b, 0, 0)),
            ],
            out_specs=pl.BlockSpec((None, hidden, HW), lambda b: (b, 0, 0)),
        ),
        compiler_params=pltpu.CompilerParams(
            dimension_semantics=("parallel",)),
    )(weight, bias2d, grid_T, x)

    return out.reshape(B, hidden, H, W)


if __name__ == "__main__":
    # Module config: SoftPositionEmbed(num_channels=3, hidden_size=32, resolution=(16,16))
    num_channels = 3           # grid has num_channels + 1 = 4 channels
    hidden_size = 32
    resolution = (16, 16)
    batch = 2

    key = jax.random.PRNGKey(0)
    k_w, k_b, k_x = jax.random.split(key, 3)

    # Deterministic synthetic parameters (nn.Linear(in=C+1, out=hidden) shapes).
    weight = jax.random.normal(k_w, (hidden_size, num_channels + 1), jnp.float32) * 0.1
    bias = jax.random.normal(k_b, (hidden_size,), jnp.float32) * 0.1
    grid = build_grid(resolution)                         # (1, H, W, C+1)

    # inputs: NCHW, channels == hidden_size (as required by the forward's assert)
    x = jax.random.normal(
        k_x, (batch, hidden_size, resolution[0], resolution[1]), jnp.float32)

    out = soft_position_embed(x, weight, bias, grid)
    out = jax.block_until_ready(out)

    # Pure-JAX reference for correctness.
    emb_ref = jnp.einsum("hwc,dc->hwd", grid[0], weight) + bias     # (H, W, hidden)
    ref = x + jnp.transpose(emb_ref, (2, 0, 1))[None]               # (B, hidden, H, W)
    if not jnp.allclose(out, ref, atol=1e-5, rtol=1e-5):
        raise AssertionError("Pallas kernel output mismatch vs reference")

    print("KERNEL_OK")
</pallas_src>

<mosaic_0001>
module attributes {stable_mosaic.version = 11 : i64} {
  func.func @_soft_pos_embed_kernel(%arg0: i32, %arg1: memref<32x4xf32, #tpu.memory_space<vmem>>, %arg2: memref<32x1xf32, #tpu.memory_space<vmem>>, %arg3: memref<4x256xf32, #tpu.memory_space<vmem>>, %arg4: memref<1x32x256xf32, #tpu.memory_space<vmem>>, %arg5: memref<1x32x256xf32, #tpu.memory_space<vmem>>) attributes {dimension_semantics = [#tpu.dimension_semantics<parallel>], iteration_bounds = array<i64: 2>, scalar_prefetch = 0 : i64, scratch_operands = 0 : i64, tpu.core_type = #tpu.core_type<tc>, window_params = [{pipeline_mode = #tpu.pipeline_mode<synchronous>, transform_indices = @transform_0, window_bounds = array<i64: 32, 4>}, {pipeline_mode = #tpu.pipeline_mode<synchronous>, transform_indices = @transform_1, window_bounds = array<i64: 32, 1>}, {pipeline_mode = #tpu.pipeline_mode<synchronous>, transform_indices = @transform_2, window_bounds = array<i64: 4, 256>}, {transform_indices = @transform_3, window_bounds = array<i64: 1, 32, 256>}, {transform_indices = @transform_4, window_bounds = array<i64: 1, 32, 256>}]} {
    %c0 = arith.constant 0 : index
    %c0_0 = arith.constant 0 : index
    %c0_1 = arith.constant 0 : index
    %0 = vector.load %arg4[%c0, %c0_0, %c0_1] : memref<1x32x256xf32, #tpu.memory_space<vmem>>, vector<1x32x256xf32>
    %1 = vector.shape_cast %0 : vector<1x32x256xf32> to vector<32x256xf32>
    %c0_2 = arith.constant 0 : index
    %c0_3 = arith.constant 0 : index
    %2 = vector.load %arg2[%c0_2, %c0_3] : memref<32x1xf32, #tpu.memory_space<vmem>>, vector<32x1xf32>
    %3 = vector.broadcast %2 : vector<32x1xf32> to vector<32x256xf32>
    %4 = arith.addf %1, %3 : vector<32x256xf32>
    %c0_4 = arith.constant 0 : index
    %c0_5 = arith.constant 0 : index
    %5 = vector.load %arg1[%c0_4, %c0_5] : memref<32x4xf32, #tpu.memory_space<vmem>>, vector<32x4xf32>
    %c0_6 = arith.constant 0 : index
    %c0_7 = arith.constant 0 : index
    %6 = vector.load %arg3[%c0_6, %c0_7] : memref<4x256xf32, #tpu.memory_space<vmem>>, vector<4x256xf32>
    %7 = vector.extract_strided_slice %5 {offsets = [0, 0], sizes = [32, 1], strides = [1, 1]} : vector<32x4xf32> to vector<32x1xf32>
    %8 = vector.extract_strided_slice %6 {offsets = [0, 0], sizes = [1, 256], strides = [1, 1]} : vector<4x256xf32> to vector<1x256xf32>
    %9 = vector.broadcast %7 : vector<32x1xf32> to vector<32x256xf32>
    %10 = vector.broadcast %8 : vector<1x256xf32> to vector<32x256xf32>
    %11 = arith.mulf %9, %10 : vector<32x256xf32>
    %12 = arith.addf %4, %11 : vector<32x256xf32>
    %13 = vector.extract_strided_slice %5 {offsets = [0, 1], sizes = [32, 1], strides = [1, 1]} : vector<32x4xf32> to vector<32x1xf32>
    %14 = vector.extract_strided_slice %6 {offsets = [1, 0], sizes = [1, 256], strides = [1, 1]} : vector<4x256xf32> to vector<1x256xf32>
    %15 = vector.broadcast %13 : vector<32x1xf32> to vector<32x256xf32>
    %16 = vector.broadcast %14 : vector<1x256xf32> to vector<32x256xf32>
    %17 = arith.mulf %15, %16 : vector<32x256xf32>
    %18 = arith.addf %12, %17 : vector<32x256xf32>
    %19 = vector.extract_strided_slice %5 {offsets = [0, 2], sizes = [32, 1], strides = [1, 1]} : vector<32x4xf32> to vector<32x1xf32>
    %20 = vector.extract_strided_slice %6 {offsets = [2, 0], sizes = [1, 256], strides = [1, 1]} : vector<4x256xf32> to vector<1x256xf32>
    %21 = vector.broadcast %19 : vector<32x1xf32> to vector<32x256xf32>
    %22 = vector.broadcast %20 : vector<1x256xf32> to vector<32x256xf32>
    %23 = arith.mulf %21, %22 : vector<32x256xf32>
    %24 = arith.addf %18, %23 : vector<32x256xf32>
    %25 = vector.extract_strided_slice %5 {offsets = [0, 3], sizes = [32, 1], strides = [1, 1]} : vector<32x4xf32> to vector<32x1xf32>
    %26 = vector.extract_strided_slice %6 {offsets = [3, 0], sizes = [1, 256], strides = [1, 1]} : vector<4x256xf32> to vector<1x256xf32>
    %27 = vector.broadcast %25 : vector<32x1xf32> to vector<32x256xf32>
    %28 = vector.broadcast %26 : vector<1x256xf32> to vector<32x256xf32>
    %29 = arith.mulf %27, %28 : vector<32x256xf32>
    %30 = arith.addf %24, %29 : vector<32x256xf32>
    %c0_8 = arith.constant 0 : index
    %c0_9 = arith.constant 0 : index
    %c0_10 = arith.constant 0 : index
    %31 = vector.load %arg5[%c0_8, %c0_9, %c0_10] : memref<1x32x256xf32, #tpu.memory_space<vmem>>, vector<1x32x256xf32>
    %32 = vector.shape_cast %31 : vector<1x32x256xf32> to vector<32x256xf32>
    %33 = vector.shape_cast %30 : vector<32x256xf32> to vector<1x32x256xf32>
    tpu.vector_store %arg5[%c0_8, %c0_9, %c0_10], %33 {strides = array<i32>} : memref<1x32x256xf32, #tpu.memory_space<vmem>>, vector<1x32x256xf32>,
    return
  }
  func.func @transform_0(%arg0: i32) -> (i32, i32) {
    %c0_i32 = arith.constant 0 : i32
    %c0_i32_0 = arith.constant 0 : i32
    %c0_i32_1 = arith.constant 0 : i32
    return %c0_i32, %c0_i32_0 : i32, i32
  }
  func.func @transform_1(%arg0: i32) -> (i32, i32) {
    %c0_i32 = arith.constant 0 : i32
    %c0_i32_0 = arith.constant 0 : i32
    %c0_i32_1 = arith.constant 0 : i32
    return %c0_i32, %c0_i32_0 : i32, i32
  }
  func.func @transform_2(%arg0: i32) -> (i32, i32) {
    %c0_i32 = arith.constant 0 : i32
    %c0_i32_0 = arith.constant 0 : i32
    %c0_i32_1 = arith.constant 0 : i32
    return %c0_i32, %c0_i32_0 : i32, i32
  }
  func.func @transform_3(%arg0: i32) -> (i32, i32, i32) {
    %c0_i32 = arith.constant 0 : i32
    %c0_i32_0 = arith.constant 0 : i32
    %c0_i32_1 = arith.constant 0 : i32
    return %arg0, %c0_i32, %c0_i32_0 : i32, i32, i32
  }
  func.func @transform_4(%arg0: i32) -> (i32, i32, i32) {
    %c0_i32 = arith.constant 0 : i32
    %c0_i32_0 = arith.constant 0 : i32
    %c0_i32_1 = arith.constant 0 : i32
    return %arg0, %c0_i32, %c0_i32_0 : i32, i32, i32
  }
}

</mosaic_0001>

<bundles_post_ra>
// kernel: tpu_custom_call.1
= control target key start
LH: loop header
LB: loop body
LE: loop exit
PB: predicated region body
PF: predicated region fallthrough
CT: control target
= control target key end

     0   :  { %9 = vsyncpa [#allocation3], 0  ;;  %s1026_s0 = inlined_call_operand.vmem [shape: f32[32,4], index: 0, kind: input, shape index: {}]   ;;  %s1027_s1 = inlined_call_operand.vmem [shape: f32[32,1], index: 1, kind: input, shape index: {}]   ;;  %s1028_s2 = inlined_call_operand.vmem [shape: f32[4,256], index: 2, kind: input, shape index: {}]   ;;  %s1029_s3 = inlined_call_operand.hbm [shape: f32[2,32,256], index: 3, kind: input, shape index: {}]   ;;  %s1030_s4 = inlined_call_operand.hbm [shape: f32[2,32,256], index: 4, kind: output, shape index: {}]  }
   0x1   :  { %11 = vsyncpa [#allocation3 + $0x1], 0 }
   0x2   :  { %12 = vsyncpa [#allocation4], 0 }
   0x3   :  { %14 = vsyncpa [#allocation4 + $0x1], 0  ;;  %s768_s15 = smov 0   ;;  %s770_s16 = smov 0  }
   0x4   :  { %s772_s17 = smov 0   ;;  %s774_s18 = smov 0  }
   0x5 LB: > { %s789_s19 = sadd.s32 4294967295, %s731_s18   ;;  %s561_s20 = sadd.s32 4294967294, %s731_s18   ;;  %s731_s18 = sphi %s774_s18, %s1045_s18   ;;  %s727_s17 = sphi %s772_s17, %s1044_s17   ;;  %s723_s16 = sphi %s770_s16, %s1043_s16   ;;  %s719_s15 = sphi %s768_s15, %s1042_s15  }
   0x6   : > { %s793_s21 = sadd.s32 1, %s731_s18   ;;  %s90_s22 = sadd.s32 1, %s727_s17 }
   0x7   : > { %s87_s23 = ssub.s32 %s731_s18, %s793_s21  ;;  %p97_p0 = scmp.ne.s32.totalorder %s727_s17, %s723_s16 }
   0x8   : > { %p88_p1 = scmp.eq.s32.totalorder %s87_s23, 0  ;;  %p98_p2 = scmp.eq.s32.totalorder %s731_s18, 0 }
   0x9   : > { %p103_p3 = scmp.ne.s32.totalorder %s723_s16, %s719_s15  ;;  %p104_p4 = scmp.eq.s32.totalorder %s789_s19, 0 }
   0xa   : > { %s805_s24 = scalar_select %p88_p1, %s727_s17, %s90_s22  }
   0xb   : > { %p807_p5 = por %p98_p2, %p97_p0  ;;  %p811_p6 = por %p104_p4, %p103_p3 }
   0xc   : > { %p127_p7 = scmp.eq.s32.totalorder %s789_s19, 1  ;;  %p133_p8 = scmp.eq.s32.totalorder %s561_s20, 1 }
   0xd   : > { %s1034_s26 = scalar_select %p811_p6, 1, 0 }
   0xe   : > { %p589_p10 = scmp.lt.s32.totalorder %s731_s18, 2  ;;  %p818_p11 = por %p127_p7, %p97_p0 }
   0xf   : > { %p822_p12 = por %p133_p8, %p103_p3  ;;  %s162_s29 = sand.u32 1, %s727_s17  }
  0x10   : > { %s1035_s27 = scalar_select %p818_p11, 1, 0 }
  0x11   : > { %s1036_s28 = scalar_select %p822_p12, 1, 0 }
  0x12   : > { %s575_s30 = sshll.u32 %s731_s18, 10  ;;  %s564_s5 = sshll.u32 %s162_s29, 6 }
  0x13   : > { %s831_s8 = scalar_lea.hbm %s1029_s3, %s575_s30  ;;  %s166_s9 = scalar_lea.vmem [#allocation2], %s564_s5 }
  0x14   : > { %s173_s10 = sshll.u32 %s166_s9, 4  ;;  %p835_p13 = pnand %p589_p10, %p807_p5  ;;  %s839_s10 = int_to_ptr.vmem [resolvable:$true] %s173_s10 }
  0x15   : > { %s841_s12 = scalar_lea.sflag [#allocation3], %s162_s29  ;;  %s639_s13 = scalar_lea.hbm %s831_s8, 1024 }
  0x16   : > { %p640_p0 = scmp.ne.s32.totalorder %s831_s8, %s639_s13  ;;  %p641_p1 = pneg %p835_p13 }
  0x17   : > { %s644_s22 = scalar_lea.hbm %s1029_s3, 2048  ;;  %p645_p4 = scmp.lt.s32.totalorder %s831_s8, %s1029_s3 }
  0x18   : > { %p642_p2 = pnand %p641_p1, %p640_p0  ;;  %p646_p5 = scmp.lt.s32.totalorder %s644_s22, %s639_s13 }
  0x1a   : > { %p643_p3 = pneg %p642_p2  ;;  %p647_p7 = por %p646_p5, %p645_p4 }
  0x1c   : > { %p648_p8 = pnand %p647_p7, %p643_p3 }
  0x1e   : > { %651 = shalt.err (!%p648_p8)
}
  0x1f   : > { %s652_s29 = scalar_lea.vmem %s839_s10, 1024  ;;  %s733_s30 = smov [#allocation2]  }
  0x20   : > { %p653_p10 = scmp.ne.s32.totalorder %s839_s10, %s652_s29  ;;  %s657_s5 = sshll.u32 %s733_s30, 4  ;;  %s658_s5 = int_to_ptr.vmem [resolvable:$false] %s657_s5 }
  0x21   : > { %s659_s6 = scalar_lea.vmem %s658_s5, 2048  ;;  %p660_p2 = scmp.lt.s32.totalorder %s839_s10, %s658_s5 }
  0x22   : > { %p655_p9 = pnand %p653_p10, %p641_p1  ;;  %p661_p12 = scmp.lt.s32.totalorder %s659_s6, %s652_s29 }
  0x24   : > { %p656_p0 = pneg %p655_p9  ;;  %p662_p11 = por %p661_p12, %p660_p2 }
  0x26   : > { %p663_p6 = pnand %p662_p11, %p656_p0 }
  0x28   : > { %666 = shalt.err (!%p663_p6)
}
  0x29   : > { %s734_s7 = smov 256   ;;  %s735_s9 = smov 16  }
  0x2a   : > { %584 = dma.hbm_to_vmem [thread:$0]  (!%p835_p13), %s831_s8, 1024, %s839_s10, %s841_s12, %s734_s7, %s734_s7, %s735_s9  }
  0x2b   : > { %p567_p9 = scmp.ge.s32.totalorder %s731_s18, 1  ;;  %p181_p1 = scmp.lt.s32.totalorder %s731_s18, 3 }
  0x2d   : > { %p182_p3 = pnand %p567_p9, %p181_p1 }
  0x2e   : > { %s865_s13 = sand.u32 (!%p182_p3), 1, %s723_s16   ;;  %p1038_p6 = scmp.ne.s32.totalorder (!%p182_p3), %s1034_s26, 0 }
  0x2f   : > { %185 = sbr.rel (%p182_p3) target bundleno = 240 (0xf0), region = 36  ;;  %s568_s14 = sshll.u32 (!%p182_p3), %s865_s13, 6 }
  0x30   : > { %s188_s20 = scalar_lea.sflag (!%p182_p3), [#allocation3], %s865_s13  ;;  %s871_s22 = scalar_lea.vmem (!%p182_p3), [#allocation2], %s568_s14 }
  0x34   : > { %710 = dma.done.wait (%p1038_p6), %s188_s20, 1024  }
  0x35   : > { %712 = vsyncadd (%p1038_p6), %s188_s20, 4294966272  ;;  %v736_v0 = vmov 0   ;;  %v226_v1 = vld [vmem:[%s1027_s1 + $0x10] sm:$0xff]  ;;  %v224_v2 = vld [vmem:[%s1027_s1] sm:$0xff]  ;;  %v737_v9 = vmov 1   ;;  %v738_v10 = vmov 2   ;;  %v282_v16 = vlaneseq }
  0x36   : > { %632 = vset.pattern.permute.xlu1 %v736_v0  ;;  %631 = vset.pattern.permute.xlu0 %v736_v0  ;;  %v227_v3 = vld [vmem:[%s1027_s1 + $0x18] sm:$0xff]  ;;  %v225_v4 = vld [vmem:[%s1027_s1 + $0x8] sm:$0xff]  ;;  %v256_v6 = vld [vmem:[%s1026_s0] sm:$0xff]  ;;  %v739_v11 = vmov 3   ;;  %p1039_p12 = scmp.ne.s32.totalorder %s1035_s27, 0  ;;  %s740_s5 = smov [#allocation5]  }
  0x37   : > { %240 = vperm.xlu1 %632, %v226_v1   ;;  %230 = vperm.xlu0 %631, %v224_v2   ;;  %v257_v5 = vld [vmem:[%s1026_s0 + $0x8] sm:$0xff]  ;;  %v259_v7 = vld [vmem:[%s1026_s0 + $0x18] sm:$0xff]  ;;  %v258_v8 = vld [vmem:[%s1026_s0 + $0x10] sm:$0xff]  ;;  %v283_v17 = vshrl.u32 %v282_v16, 7  ;;  %s671_s6 = sshll.u32 %s740_s5, 4  ;;  %s672_s6 = int_to_ptr.vmem [resolvable:$false] %s671_s6 }
  0x38   : > { %v260_v24 = vld [vmem:[%s1028_s2] sm:$0xff]  ;;  %v217_v42 = vld [vmem:[%s871_s22 + $0x8] sm:$0xff]  ;;  %v218_v49 = vld [vmem:[%s871_s22 + $0x10] sm:$0xff]  ;;  %s673_s7 = scalar_lea.vmem %s672_s6, 2048 }
  0x39   : > { %v284_v20 = vsub.s32 0, %v283_v17  ;;  %v288_v21 = vsub.s32 4, %v283_v17  ;;  %v334_v25 = vsub.s32 1, %v283_v17  ;;  %v338_v26 = vsub.s32 5, %v283_v17  ;;  %v216_v41 = vld [vmem:[%s871_s22] sm:$0xff]  ;;  %v219_v50 = vld [vmem:[%s871_s22 + $0x18] sm:$0xff] }
  0x3a   : > { %v384_v27 = vsub.s32 2, %v283_v17  ;;  %v388_v28 = vsub.s32 6, %v283_v17  ;;  %v434_v33 = vsub.s32 3, %v283_v17  ;;  %v438_v34 = vsub.s32 7, %v283_v17  ;;  %v222_v59 = vld [vmem:[%s871_s22 + $0x30] sm:$0xff]  ;;  %v223_v60 = vld [vmem:[%s871_s22 + $0x38] sm:$0xff] }
  0x3b   : > { %245 = vperm.xlu1 %632, %v227_v3   ;;  %235 = vperm.xlu0 %631, %v225_v4   ;;  %v285_v29 = vrot.slane %v260_v24, %v284_v20  ;;  %v289_v30 = vrot.slane %v260_v24, %v288_v21  ;;  %v335_v35 = vrot.slane %v260_v24, %v334_v25 }
  0x3c   : > { %v339_v36 = vrot.slane %v260_v24, %v338_v26  ;;  %v385_v37 = vrot.slane %v260_v24, %v384_v27  ;;  %v389_v38 = vrot.slane %v260_v24, %v388_v28  ;;  %v435_v45 = vrot.slane %v260_v24, %v434_v33 }
  0x3d   : > { %v295_v39 = vrot.slane %v285_v29, %v284_v20  ;;  %v299_v40 = vrot.slane %v289_v30, %v284_v20  ;;  %v439_v46 = vrot.slane %v260_v24, %v438_v34  ;;  %v914_v47 = vrot.slane %v335_v35, %v334_v25  ;;  %v221_v30 = vld [vmem:[%s871_s22 + $0x28] sm:$0xff] }
  0x3e   : > { %v916_v48 = vrot.slane %v339_v36, %v334_v25  ;;  %v920_v51 = vrot.slane %v385_v37, %v384_v27  ;;  %v922_v52 = vrot.slane %v389_v38, %v384_v27  ;;  %v924_v57 = vrot.slane %v435_v45, %v434_v33 }
  0x3f   : > { %268 = vperm.xlu1 %632, %v257_v5   ;;  %263 = vperm.xlu0 %631, %v256_v6   ;;  %v926_v58 = vrot.slane %v439_v46, %v434_v33 }
  0x43   : > { %278 = vperm.xlu1 %632, %v259_v7   ;;  %273 = vperm.xlu0 %631, %v258_v8  }
  0x47   : > { %634 = vset.pattern.permute.xlu1 %v737_v9  ;;  %633 = vset.pattern.permute.xlu0 %v737_v9 }
  0x48   : > { %321 = vperm.xlu1 %634, %v257_v5   ;;  %317 = vperm.xlu0 %633, %v256_v6  }
  0x4c   : > { %325 = vperm.xlu1 %634, %v258_v8   ;;  %329 = vperm.xlu0 %633, %v259_v7  }
  0x50   : > { %635 = vset.pattern.permute.xlu1 %v738_v10  ;;  %636 = vset.pattern.permute.xlu0 %v738_v10 }
  0x51   : > { %367 = vperm.xlu1 %635, %v256_v6   ;;  %371 = vperm.xlu0 %636, %v257_v5  }
  0x55   : > { %375 = vperm.xlu1 %635, %v258_v8   ;;  %637 = vset.pattern.permute.xlu0 %v739_v11 }
  0x56   : > { %417 = vperm.xlu0 %637, %v256_v6  }
  0x59   : > { %379 = vperm.xlu1 %635, %v259_v7  }
  0x5a   : > { %429 = vperm.xlu0 %637, %v259_v7  }
  0x5d   : > { %638 = vset.pattern.permute.xlu1 %v739_v11 }
  0x5e   : > { %421 = vperm.xlu1 %638, %v257_v5  }
  0x62   : > { %425 = vperm.xlu1 %638, %v258_v8  }
  0xb2   : > { %v901_v12 = vpop.permute.xlu1 %240  ;;  %v231_v13 = vpop.permute.xlu0 %230 }
  0xb3   : > { %v248_v53 = vadd.f32 %v231_v13, %v216_v41  ;;  %v249_v54 = vadd.f32 %v231_v13, %v217_v42 }
  0xb6   : > { %v246_v14 = vpop.permute.xlu1 %245  ;;  %v236_v15 = vpop.permute.xlu0 %235 }
  0xb7   : > { %v250_v61 = vadd.f32 %v236_v15, %v218_v49  ;;  %v251_v62 = vadd.f32 %v236_v15, %v219_v50  ;;  %v254_v11 = vadd.f32 %v246_v14, %v222_v59  ;;  %v255_v13 = vadd.f32 %v246_v14, %v223_v60  ;;  %v220_v14 = vld [vmem:[%s871_s22 + $0x20] sm:$0xff]  ;;  %s954_s22 = scalar_lea.vmem [#allocation5], %s568_s14  ;;  %s576_s14 = sshll.u32 %s789_s19, 10 }
  0xb8   : > { %v253_v49 = vadd.f32 %v901_v12, %v221_v30  ;;  %s488_s23 = sshll.u32 %s954_s22, 4  ;;  %s979_s26 = scalar_lea.hbm %s1030_s4, %s576_s14  ;;  %s981_s23 = int_to_ptr.vmem [resolvable:$true] %s488_s23 }
  0xb9   : > { %s475_s19 = scalar_lea.sflag [#allocation4], %s865_s13  ;;  %s667_s30 = scalar_lea.vmem %s981_s23, 1024 }
  0xba   : > { %v269_v18 = vpop.permute.xlu1 %268  ;;  %v264_v19 = vpop.permute.xlu0 %263  ;;  %p668_p11 = scmp.ne.s32.totalorder %s981_s23, %s667_s30  ;;  %p674_p5 = scmp.lt.s32.totalorder %s981_s23, %s672_s6 }
  0xbb   : > { %v300_v55 = vmul.f32 %v295_v39, %v264_v19  ;;  %v301_v56 = vmul.f32 %v299_v40, %v264_v19  ;;  %v302_v3 = vmul.f32 %v295_v39, %v269_v18  ;;  %v303_v4 = vmul.f32 %v299_v40, %v269_v18  ;;  %p675_p7 = scmp.lt.s32.totalorder %s673_s7, %s667_s30 }
  0xbc   : > { %p669_p13 = pnand %p668_p11, %p1039_p12 }
  0xbd   : > { %v308_v7 = vadd.f32 %v300_v55, %v248_v53  ;;  %v309_v8 = vadd.f32 %v301_v56, %v249_v54  ;;  %v310_v18 = vadd.f32 %v302_v3, %v250_v61  ;;  %v311_v21 = vadd.f32 %v303_v4, %v251_v62  ;;  %p676_p8 = por %p675_p7, %p674_p5 }
  0xbe   : > { %v279_v22 = vpop.permute.xlu1 %278  ;;  %v903_v23 = vpop.permute.xlu0 %273  ;;  %p670_p4 = pneg %p669_p13 }
  0xbf   : > { %v306_v5 = vmul.f32 %v295_v39, %v279_v22  ;;  %v307_v6 = vmul.f32 %v299_v40, %v279_v22  ;;  %v305_v33 = vmul.f32 %v299_v40, %v903_v23  ;;  %v252_v40 = vadd.f32 %v901_v12, %v220_v14 }
  0xc0   : > { %p677_p10 = pnand %p676_p8, %p670_p4 }
  0xc1   : > { %v314_v22 = vadd.f32 %v306_v5, %v254_v11  ;;  %v315_v24 = vadd.f32 %v307_v6, %v255_v13  ;;  %v313_v60 = vadd.f32 %v305_v33, %v253_v49 }
  0xc3   : > { %v908_v31 = vpop.permute.xlu1 %321  ;;  %v318_v32 = vpop.permute.xlu0 %317 }
  0xc4   : > { %v350_v63 = vmul.f32 %v914_v47, %v318_v32  ;;  %v351_v0 = vmul.f32 %v916_v48, %v318_v32  ;;  %v304_v32 = vmul.f32 %v295_v39, %v903_v23  ;;  %v352_v34 = vmul.f32 %v914_v47, %v908_v31 }
  0xc5   : > { %v353_v35 = vmul.f32 %v916_v48, %v908_v31 }
  0xc6   : > { %v358_v15 = vadd.f32 %v350_v63, %v308_v7  ;;  %v359_v16 = vadd.f32 %v351_v0, %v309_v8  ;;  %v360_v53 = vadd.f32 %v352_v34, %v310_v18  ;;  %v312_v59 = vadd.f32 %v304_v32, %v252_v40 }
  0xc7   : > { %v912_v43 = vpop.permute.xlu1 %325  ;;  %v330_v44 = vpop.permute.xlu0 %329  ;;  %v361_v54 = vadd.f32 %v353_v35, %v311_v21 }
  0xc8   : > { %v356_v17 = vmul.f32 %v914_v47, %v330_v44  ;;  %v357_v19 = vmul.f32 %v916_v48, %v330_v44  ;;  %v354_v12 = vmul.f32 %v914_v47, %v912_v43  ;;  %v355_v61 = vmul.f32 %v916_v48, %v912_v43 }
  0xca   : > { %v364_v36 = vadd.f32 %v356_v17, %v314_v22  ;;  %v365_v37 = vadd.f32 %v357_v19, %v315_v24  ;;  %v362_v43 = vadd.f32 %v354_v12, %v312_v59  ;;  %v363_v48 = vadd.f32 %v355_v61, %v313_v60 }
  0xcc   : > { %v368_v1 = vpop.permute.xlu1 %367  ;;  %v372_v2 = vpop.permute.xlu0 %371 }
  0xcd   : > { %v400_v9 = vmul.f32 %v920_v51, %v368_v1  ;;  %v401_v10 = vmul.f32 %v922_v52, %v368_v1  ;;  %v402_v44 = vmul.f32 %v920_v51, %v372_v2  ;;  %v403_v45 = vmul.f32 %v922_v52, %v372_v2 }
  0xcf   : > { %v408_v26 = vadd.f32 %v400_v9, %v358_v15  ;;  %v409_v27 = vadd.f32 %v401_v10, %v359_v16  ;;  %v410_v62 = vadd.f32 %v402_v44, %v360_v53  ;;  %v411_v63 = vadd.f32 %v403_v45, %v361_v54 }
  0xd0   : > { %v376_v20 = vpop.permute.xlu1 %375 }
  0xd1   : > { %v418_v25 = vpop.permute.xlu0 %417  ;;  %v404_v3 = vmul.f32 %v920_v51, %v376_v20  ;;  %v405_v4 = vmul.f32 %v922_v52, %v376_v20 }
  0xd2   : > { %v450_v28 = vmul.f32 %v924_v57, %v418_v25  ;;  %v451_v29 = vmul.f32 %v926_v58, %v418_v25 }
  0xd3   : > { %v413_v9 = vadd.f32 %v405_v4, %v363_v48 }
  0xd4   : > { %v458_v38 = vadd.f32 %v450_v28, %v408_v26  ;;  %v459_v41 = vadd.f32 %v451_v29, %v409_v27  ;;  %v380_v42 = vpop.permute.xlu1 %379 }
  0xd5   : > { %v406_v39 = vmul.f32 %v920_v51, %v380_v42  ;;  %v407_v46 = vmul.f32 %v922_v52, %v380_v42  ;;  %v430_v23 = vpop.permute.xlu0 %429  ;;  %v412_v51 = vadd.f32 %v404_v3, %v362_v43 }
  0xd6   : > { %466 = vst [vmem:[%s954_s22] sm:$0xff] %v458_v38  ;;  %467 = vst [vmem:[%s954_s22 + $0x8] sm:$0xff] %v459_v41  ;;  %v456_v31 = vmul.f32 %v924_v57, %v430_v23  ;;  %v457_v50 = vmul.f32 %v926_v58, %v430_v23 }
  0xd7   : > { %v414_v55 = vadd.f32 %v406_v39, %v364_v36  ;;  %v415_v56 = vadd.f32 %v407_v46, %v365_v37 }
  0xd9   : > { %v464_v0 = vadd.f32 %v456_v31, %v414_v55  ;;  %v465_v1 = vadd.f32 %v457_v50, %v415_v56  ;;  %v422_v2 = vpop.permute.xlu1 %421 }
  0xda   : > { %v452_v5 = vmul.f32 %v924_v57, %v422_v2  ;;  %v453_v47 = vmul.f32 %v926_v58, %v422_v2 }
  0xdb   : > { %472 = vst [vmem:[%s954_s22 + $0x30] sm:$0xff] %v464_v0  ;;  %473 = vst [vmem:[%s954_s22 + $0x38] sm:$0xff] %v465_v1 }
  0xdc   : > { %v460_v6 = vadd.f32 %v452_v5, %v410_v62  ;;  %v461_v7 = vadd.f32 %v453_v47, %v411_v63 }
  0xdd   : > { %v426_v8 = vpop.permute.xlu1 %425 }
  0xde   : > { %468 = vst [vmem:[%s954_s22 + $0x10] sm:$0xff] %v460_v6  ;;  %469 = vst [vmem:[%s954_s22 + $0x18] sm:$0xff] %v461_v7  ;;  %v454_v52 = vmul.f32 %v924_v57, %v426_v8  ;;  %v455_v10 = vmul.f32 %v926_v58, %v426_v8 }
  0xe0   : > { %v462_v11 = vadd.f32 %v454_v52, %v412_v51  ;;  %v463_v13 = vadd.f32 %v455_v10, %v413_v9 }
  0xe2   : > { %470 = vst [vmem:[%s954_s22 + $0x20] sm:$0xff] %v462_v11  ;;  %471 = vst [vmem:[%s954_s22 + $0x28] sm:$0xff] %v463_v13 }
  0xe3   : > { %680 = shalt.err (!%p677_p10)
}
  0xe4   : > { %s681_s9 = scalar_lea.hbm %s979_s26, 1024  ;;  %s685_s10 = scalar_lea.hbm %s1030_s4, 2048 }
  0xe5   : > { %p682_p0 = scmp.ne.s32.totalorder %s979_s26, %s681_s9  ;;  %p686_p1 = scmp.lt.s32.totalorder %s979_s26, %s1030_s4 }
  0xe6   : > { %p687_p3 = scmp.lt.s32.totalorder %s685_s10, %s681_s9 }
  0xe7   : > { %p683_p2 = pnand %p682_p0, %p1039_p12 }
  0xe8   : > { %p688_p6 = por %p687_p3, %p686_p1 }
  0xe9   : > { %p684_p9 = pneg %p683_p2 }
  0xeb   : > { %p689_p11 = pnand %p688_p6, %p684_p9 }
  0xed   : > { %692 = shalt.err (!%p689_p11)
}
  0xee   : > { %s741_s22 = smov 256   ;;  %s742_s14 = smov 16  }
  0xef   : > { %579 = dma.vmem_to_hbm [thread:$0]  (%p1039_p12), %s981_s23, 1024, %s979_s26, %s475_s19, %s741_s22, %s741_s22, %s742_s14  }
  0xf0 PF: > { %s503_s25 = sand.u32 1, %s719_s15   ;;  %p1040_p13 = scmp.ne.s32.totalorder %s1036_s28, 0 }
  0xf1   : > { %p1041_p4 = scmp.ge.s32.totalorder %s731_s18, 2  ;;  %s504_s29 = scalar_lea.sflag [#allocation4], %s503_s25 }
  0xf3   : > { %p586_p5 = pnand %p1041_p4, %p1040_p13 }
  0xf5   : > { %p587_p7 = pneg %p586_p5 }
  0xf7   : > { %714 = dma.done.wait (%p587_p7), %s504_s29, 1024  }
  0xf8   : > { %716 = vsyncadd (%p587_p7), %s504_s29, 4294966272  ;;  %p17_p8 = scmp.ge.s32.totalorder %s793_s21, 4   ;;  %s1042_s15 = smov %s723_s16 }
  0xf9   : > { %s1043_s16 = smov %s727_s17  ;;  %s1044_s17 = smov %s805_s24 }
  0xfa   : > { %s1045_s18 = smov %s793_s21  ;;  %19 = sbr.rel (!%p17_p8) target bundleno = 5 (0x5), region = 81 }
  0xff   :  { %509 = vsyncpa [#allocation3], 1 }
 0x100   :  { %511 = vsyncpa [#allocation3 + $0x1], 1 }
 0x101   :  { %512 = vsyncpa [#allocation4], 1 }
 0x102   :  { %514 = vsyncpa [#allocation4 + $0x1], 1 }

</bundles_post_ra>
